<compile_context>
chip_gen: v6e
topology: v6e:2x2x1
jax: 0.10.0
libtpu: 0.0.40
codegen_flags: <defaults>
</compile_context>

<pallas_src>
import functools

import jax
import jax.numpy as jnp
from jax import lax
from jax.experimental import pallas as pl
from jax.experimental.pallas import tpu as pltpu

LANE = 128
SUBLANE = 8
MIN_ROWS = 16          # multiple of 16 -> valid tiling for both f32 and bf16 inputs
STRIP_ROWS = 256       # compute strip: bounds live vregs inside a tile


def _elementwise_loss(x, t, pos_weight, smoothing):
    """Numerically-stable BCEWithLogits (+pos_weight, +label smoothing).

    pos_weight / smoothing are Python floats -> constant-folded at trace time.
    """
    x = x.astype(jnp.float32)
    t = t.astype(jnp.float32)
    if smoothing != 0.0:
        t = t * (1.0 - smoothing) + 0.5 * smoothing
    # torch-stable form: softplus(-x) = log1p(exp(-|x|)) + max(-x, 0)
    sp = jnp.log1p(jnp.exp(-jnp.abs(x))) + jnp.maximum(-x, 0.0)
    if pos_weight != 1.0:
        sp = (1.0 + (pos_weight - 1.0) * t) * sp
    return (1.0 - t) * x + sp


def _bce_kernel(x_ref, t_ref, out_ref, *, rows, block_rows, inner_steps,
                strip_rows, pos_weight, smoothing):
    """Partial-sum accumulation of the weighted/smoothed BCE loss.

    x_ref / t_ref : VMEM (block_rows, LANE) tiles (native dtype, cast in-kernel)
    out_ref       : VMEM (1, 8, 128) f32 partial-sum block, resident across the
                    inner ('arbitrary') grid axis.
    """
    i = pl.program_id(0)   # parallel chunk
    j = pl.program_id(1)   # reduction step within chunk

    @pl.when(j == 0)
    def _init():
        out_ref[...] = jnp.zeros_like(out_ref)

    blk = i * inner_steps + j                 # logical (unclamped) block id
    valid_rows = rows - blk * block_rows      # rows of real data in this block

    def block_sum(masked):
        def strip_sum(r0, nrows):
            x = x_ref[pl.ds(r0, nrows), :].astype(jnp.float32)
            t = t_ref[pl.ds(r0, nrows), :].astype(jnp.float32)
            if masked:
                row_iota = lax.broadcasted_iota(jnp.int32, (nrows, LANE), 0)
                valid = (r0 + row_iota) < valid_rows
                # rows past the array end are uninitialized block padding
                x = jnp.where(valid, x, 0.0)
                t = jnp.where(valid, t, 0.0)
            loss = _elementwise_loss(x, t, pos_weight, smoothing)
            if masked:
                loss = jnp.where(valid, loss, 0.0)
            # fold the strip into one (8, 128) vreg of partial sums (pure VPU adds)
            return jnp.sum(loss.reshape(nrows // SUBLANE, SUBLANE, LANE), axis=0)

        acc = jnp.zeros((SUBLANE, LANE), jnp.float32)
        n_full = block_rows // strip_rows
        if n_full > 0:
            def body(s, a):
                r0 = pl.multiple_of(s * strip_rows, strip_rows)
                return a + strip_sum(r0, strip_rows)
            acc = lax.fori_loop(0, n_full, body, acc, unroll=True)
        rem = block_rows % strip_rows          # multiple of 16 by construction
        if rem:
            acc = acc + strip_sum(n_full * strip_rows, rem)
        return acc

    # ---- hot path: fully valid block, no masking at all ----
    @pl.when(valid_rows >= block_rows)
    def _full():
        out_ref[...] += block_sum(masked=False)[None, :, :]

    # ---- tail path: partially valid block (runs at most once per chunk) ----
    @pl.when(jnp.logical_and(valid_rows > 0, valid_rows < block_rows))
    def _partial():
        out_ref[...] += block_sum(masked=True)[None, :, :]

    # valid_rows <= 0 (duplicate block from grid rounding): nothing to add.


def weighted_smooth_bce(logits, targets, pos_weight=1.0, smoothing=0.0,
                        *, max_block_rows=None):
    """Pallas TPU equivalent of WeightedSmoothBCE.forward (reduction='mean')."""
    assert logits.shape == targets.shape
    pos_weight = float(pos_weight)   # module stores these as Python floats
    smoothing = float(smoothing)
    n = logits.size

    flat_l = logits.reshape(-1)
    flat_t = targets.reshape(-1)

    rows = n // LANE                 # full 128-lane rows
    n_main = rows * LANE

    # Tiny inputs: plain-JAX fallback (the kernel needs >= 16 full rows).
    if rows < MIN_ROWS:
        return jnp.sum(_elementwise_loss(flat_l, flat_t, pos_weight, smoothing)) / n

    # Ragged remainder (< 128 elements): tiny plain-JAX partial sum, no padding.
    tail_sum = jnp.float32(0.0)
    if n_main < n:
        tail_sum = jnp.sum(_elementwise_loss(flat_l[n_main:], flat_t[n_main:],
                                             pos_weight, smoothing))
        # TODO(synk): for n % 128 != 0 XLA materializes flat[:n_main] once;
        # could be removed with allow_input_fusion, left out for robustness.
        flat_l = flat_l[:n_main]
        flat_t = flat_t[:n_main]

    l2 = flat_l.reshape(rows, LANE)
    t2 = flat_t.reshape(rows, LANE)

    if max_block_rows is None:
        itemsize = max(jnp.dtype(logits.dtype).itemsize,
                       jnp.dtype(targets.dtype).itemsize)
        # ~2 MiB per input stream per tile; x2 streams x2 buffers = 8 MiB VMEM,
        # comfortably inside every generation's scoped-VMEM budget.
        max_block_rows = 4096 if itemsize >= 4 else 8192

    if rows >= max_block_rows:
        block_rows = max_block_rows
    else:
        block_rows = max(MIN_ROWS, (rows // MIN_ROWS) * MIN_ROWS)
    strip_rows = min(STRIP_ROWS, block_rows)

    total_blocks = pl.cdiv(rows, block_rows)
    num_chunks = 2 if total_blocks >= 2 else 1      # 2 TCs on v7x; harmless elsewhere
    inner_steps = pl.cdiv(total_blocks, num_chunks)
    last_block = total_blocks - 1

    def in_map(i, j):
        # Clamp so grid-rounding duplicates re-read a real block; their
        # contribution is skipped in-kernel (valid_rows <= 0).
        return (jnp.minimum(i * inner_steps + j, last_block), 0)

    tile_spec = pl.BlockSpec((block_rows, LANE), in_map)

    kernel = functools.partial(
        _bce_kernel, rows=rows, block_rows=block_rows, inner_steps=inner_steps,
        strip_rows=strip_rows, pos_weight=pos_weight, smoothing=smoothing)

    partials = pl.pallas_call(
        kernel,
        out_shape=jax.ShapeDtypeStruct((num_chunks, SUBLANE, LANE), jnp.float32),
        grid=(num_chunks, inner_steps),
        in_specs=[tile_spec, tile_spec],
        out_specs=pl.BlockSpec((1, SUBLANE, LANE), lambda i, j: (i, 0, 0)),
        compiler_params=pltpu.CompilerParams(
            dimension_semantics=("parallel", "arbitrary"),
            vmem_limit_bytes=32 * 1024 * 1024),
    )(l2, t2)

    # Tiny final reduction + mean outside the kernel.
    return (jnp.sum(partials) + tail_sum) / n


def _reference_jax(logits, targets, pos_weight, smoothing):
    x = logits.astype(jnp.float32)
    t = targets.astype(jnp.float32)
    if smoothing > 0.0:
        t = t * (1.0 - smoothing) + 0.5 * smoothing
    log_weight = 1.0 + (pos_weight - 1.0) * t
    loss = (1.0 - t) * x + log_weight * (jnp.log1p(jnp.exp(-jnp.abs(x))) +
                                         jnp.maximum(-x, 0.0))
    return jnp.mean(loss)


if __name__ == "__main__":
    # Deterministic "parameters" from the module __init__ (scalar buffer + float).
    POS_WEIGHT = 2.0
    SMOOTHING = 0.1

    key = jax.random.PRNGKey(0)
    k1, k2, k3, k4 = jax.random.split(key, 4)

    # Primary example: per-pixel binary classification head, NCHW (2, 4, 16, 16).
    logits = jax.random.normal(k1, (2, 4, 16, 16), dtype=jnp.float32) * 2.0
    targets = (jax.random.uniform(k2, (2, 4, 16, 16)) > 0.5).astype(jnp.float32)

    loss = weighted_smooth_bce(logits, targets,
                               pos_weight=POS_WEIGHT, smoothing=SMOOTHING)
    loss = jax.block_until_ready(loss)
    ref = _reference_jax(logits, targets, POS_WEIGHT, SMOOTHING)
    assert jnp.allclose(loss, ref, rtol=1e-5, atol=1e-5), (loss, ref)

    # Secondary check: ragged size + forced small blocks exercises the
    # partial-block mask path, the duplicate-block skip and the plain-JAX tail.
    logits2 = jax.random.normal(k3, (2, 3, 811), dtype=jnp.float32)
    targets2 = (jax.random.uniform(k4, (2, 3, 811)) > 0.5).astype(jnp.float32)
    loss2 = weighted_smooth_bce(logits2, targets2, pos_weight=1.0, smoothing=0.0,
                                max_block_rows=16)
    loss2 = jax.block_until_ready(loss2)
    ref2 = _reference_jax(logits2, targets2, 1.0, 0.0)
    assert jnp.allclose(loss2, ref2, rtol=1e-5, atol=1e-5), (loss2, ref2)

    print("KERNEL_OK")
</pallas_src>

<mosaic_0001>
module attributes {stable_mosaic.version = 11 : i64} {
  func.func @_bce_kernel(%arg0: i32, %arg1: i32, %arg2: memref<16x128xf32, #tpu.memory_space<vmem>>, %arg3: memref<16x128xf32, #tpu.memory_space<vmem>>, %arg4: memref<1x8x128xf32, #tpu.memory_space<vmem>>) attributes {dimension_semantics = [#tpu.dimension_semantics<parallel>, #tpu.dimension_semantics<arbitrary>], iteration_bounds = array<i64: 1, 1>, scalar_prefetch = 0 : i64, scratch_operands = 0 : i64, tpu.core_type = #tpu.core_type<tc>, window_params = [{transform_indices = @transform_0, window_bounds = array<i64: 16, 128>}, {transform_indices = @transform_1, window_bounds = array<i64: 16, 128>}, {transform_indices = @transform_2, window_bounds = array<i64: 1, 8, 128>}]} {
    %c0_i32 = arith.constant 0 : i32
    %0 = arith.cmpi eq, %arg1, %c0_i32 : i32
    %1 = arith.extui %0 : i1 to i32
    %c0_i32_0 = arith.constant 0 : i32
    %2 = arith.cmpi ne, %1, %c0_i32_0 : i32
    scf.if %2 {
      %cst = arith.constant 0.000000e+00 : f32
      %15 = vector.broadcast %cst : f32 to vector<1x8x128xf32>
      %c0 = arith.constant 0 : index
      %c0_7 = arith.constant 0 : index
      %c0_8 = arith.constant 0 : index
      %16 = vector.load %arg4[%c0, %c0_7, %c0_8] : memref<1x8x128xf32, #tpu.memory_space<vmem>>, vector<1x8x128xf32>
      tpu.vector_store %arg4[%c0, %c0_7, %c0_8], %15 {strides = array<i32>} : memref<1x8x128xf32, #tpu.memory_space<vmem>>, vector<1x8x128xf32>,
    } else {
    }
    %c1_i32 = arith.constant 1 : i32
    %3 = arith.muli %arg0, %c1_i32 : i32
    %4 = arith.addi %3, %arg1 : i32
    %c16_i32 = arith.constant 16 : i32
    %5 = arith.muli %4, %c16_i32 : i32
    %c16_i32_1 = arith.constant 16 : i32
    %6 = arith.subi %c16_i32_1, %5 : i32
    %c16_i32_2 = arith.constant 16 : i32
    %7 = arith.cmpi sge, %6, %c16_i32_2 : i32
    %8 = arith.extui %7 : i1 to i32
    %c0_i32_3 = arith.constant 0 : i32
    %9 = arith.cmpi ne, %8, %c0_i32_3 : i32
    scf.if %9 {
      %c0 = arith.constant 0 : index
      %c0_7 = arith.constant 0 : index
      %c0_8 = arith.constant 0 : index
      %15 = vector.load %arg4[%c0, %c0_7, %c0_8] : memref<1x8x128xf32, #tpu.memory_space<vmem>>, vector<1x8x128xf32>
      %cst = arith.constant 0.000000e+00 : f32
      %16 = vector.broadcast %cst : f32 to vector<8x128xf32>
      %c0_i32_9 = arith.constant 0 : i32
      %c16_i32_10 = arith.constant 16 : i32
      %17 = arith.muli %c0_i32_9, %c16_i32_10 : i32
      %18 = tpu.assume_multiple %17, 16 : i32
      %19 = arith.index_cast %18 : i32 to index
      %c0_11 = arith.constant 0 : index
      %20 = vector.load %arg2[%19, %c0_11] : memref<16x128xf32, #tpu.memory_space<vmem>>, vector<16x128xf32>
      %21 = arith.index_cast %18 : i32 to index
      %c0_12 = arith.constant 0 : index
      %22 = vector.load %arg3[%21, %c0_12] : memref<16x128xf32, #tpu.memory_space<vmem>>, vector<16x128xf32>
      %cst_13 = arith.constant 0.899999976 : f32
      %23 = vector.broadcast %cst_13 : f32 to vector<16x128xf32>
      %24 = arith.mulf %22, %23 : vector<16x128xf32>
      %cst_14 = arith.constant 5.000000e-02 : f32
      %25 = vector.broadcast %cst_14 : f32 to vector<16x128xf32>
      %26 = arith.addf %24, %25 : vector<16x128xf32>
      %27 = math.absf %20 : vector<16x128xf32>
      %cst_15 = arith.constant 0.000000e+00 : f32
      %28 = vector.broadcast %cst_15 : f32 to vector<16x128xf32>
      %29 = arith.subf %28, %27 : vector<16x128xf32>
      %30 = math.exp %29 : vector<16x128xf32>
      %31 = math.log1p %30 : vector<16x128xf32>
      %cst_16 = arith.constant 0.000000e+00 : f32
      %32 = vector.broadcast %cst_16 : f32 to vector<16x128xf32>
      %33 = arith.subf %32, %20 : vector<16x128xf32>
      %cst_17 = arith.constant 0.000000e+00 : f32
      %34 = vector.broadcast %cst_17 : f32 to vector<16x128xf32>
      %35 = arith.maximumf %33, %34 : vector<16x128xf32>
      %36 = arith.addf %31, %35 : vector<16x128xf32>
      %cst_18 = arith.constant 1.000000e+00 : f32
      %37 = vector.broadcast %cst_18 : f32 to vector<16x128xf32>
      %38 = arith.mulf %37, %26 : vector<16x128xf32>
      %cst_19 = arith.constant 1.000000e+00 : f32
      %39 = vector.broadcast %cst_19 : f32 to vector<16x128xf32>
      %40 = arith.addf %39, %38 : vector<16x128xf32>
      %41 = arith.mulf %40, %36 : vector<16x128xf32>
      %cst_20 = arith.constant 1.000000e+00 : f32
      %42 = vector.broadcast %cst_20 : f32 to vector<16x128xf32>
      %43 = arith.subf %42, %26 : vector<16x128xf32>
      %44 = arith.mulf %43, %20 : vector<16x128xf32>
      %45 = arith.addf %44, %41 : vector<16x128xf32>
      %46 = vector.shape_cast %45 : vector<16x128xf32> to vector<2x8x128xf32>
      %cst_21 = arith.constant dense<0.000000e+00> : vector<8x128xf32>
      %47 = vector.multi_reduction <add>, %46, %cst_21 [0] : vector<2x8x128xf32> to vector<8x128xf32>
      %48 = arith.addf %16, %47 : vector<8x128xf32>
      %c1_i32_22 = arith.constant 1 : i32
      %49 = vector.shape_cast %48 : vector<8x128xf32> to vector<1x8x128xf32>
      %50 = arith.addf %15, %49 : vector<1x8x128xf32>
      %c0_23 = arith.constant 0 : index
      %c0_24 = arith.constant 0 : index
      %c0_25 = arith.constant 0 : index
      %51 = vector.load %arg4[%c0_23, %c0_24, %c0_25] : memref<1x8x128xf32, #tpu.memory_space<vmem>>, vector<1x8x128xf32>
      tpu.vector_store %arg4[%c0_23, %c0_24, %c0_25], %50 {strides = array<i32>} : memref<1x8x128xf32, #tpu.memory_space<vmem>>, vector<1x8x128xf32>,
    } else {
    }
    %c0_i32_4 = arith.constant 0 : i32
    %10 = arith.cmpi sgt, %6, %c0_i32_4 : i32
    %c16_i32_5 = arith.constant 16 : i32
    %11 = arith.cmpi slt, %6, %c16_i32_5 : i32
    %12 = arith.andi %10, %11 : i1
    %13 = arith.extui %12 : i1 to i32
    %c0_i32_6 = arith.constant 0 : i32
    %14 = arith.cmpi ne, %13, %c0_i32_6 : i32
    scf.if %14 {
      %c0 = arith.constant 0 : index
      %c0_7 = arith.constant 0 : index
      %c0_8 = arith.constant 0 : index
      %15 = vector.load %arg4[%c0, %c0_7, %c0_8] : memref<1x8x128xf32, #tpu.memory_space<vmem>>, vector<1x8x128xf32>
      %cst = arith.constant 0.000000e+00 : f32
      %16 = vector.broadcast %cst : f32 to vector<8x128xf32>
      %c0_i32_9 = arith.constant 0 : i32
      %c16_i32_10 = arith.constant 16 : i32
      %17 = arith.muli %c0_i32_9, %c16_i32_10 : i32
      %18 = tpu.assume_multiple %17, 16 : i32
      %19 = arith.index_cast %18 : i32 to index
      %c0_11 = arith.constant 0 : index
      %20 = vector.load %arg2[%19, %c0_11] : memref<16x128xf32, #tpu.memory_space<vmem>>, vector<16x128xf32>
      %21 = arith.index_cast %18 : i32 to index
      %c0_12 = arith.constant 0 : index
      %22 = vector.load %arg3[%21, %c0_12] : memref<16x128xf32, #tpu.memory_space<vmem>>, vector<16x128xf32>
      %23 = tpu.iota {dimensions = array<i32: 0>} : vector<16x128xi32>
      %24 = vector.broadcast %18 : i32 to vector<16x128xi32>
      %25 = arith.addi %24, %23 : vector<16x128xi32>
      %26 = vector.broadcast %6 : i32 to vector<16x128xi32>
      %27 = arith.cmpi slt, %25, %26 : vector<16x128xi32>
      %cst_13 = arith.constant 0.000000e+00 : f32
      %28 = vector.broadcast %cst_13 : f32 to vector<16x128xf32>
      %29 = arith.select %27, %20, %28 : vector<16x128xi1>, vector<16x128xf32>
      %cst_14 = arith.constant 0.000000e+00 : f32
      %30 = vector.broadcast %cst_14 : f32 to vector<16x128xf32>
      %31 = arith.select %27, %22, %30 : vector<16x128xi1>, vector<16x128xf32>
      %cst_15 = arith.constant 0.899999976 : f32
      %32 = vector.broadcast %cst_15 : f32 to vector<16x128xf32>
      %33 = arith.mulf %31, %32 : vector<16x128xf32>
      %cst_16 = arith.constant 5.000000e-02 : f32
      %34 = vector.broadcast %cst_16 : f32 to vector<16x128xf32>
      %35 = arith.addf %33, %34 : vector<16x128xf32>
      %36 = math.absf %29 : vector<16x128xf32>
      %cst_17 = arith.constant 0.000000e+00 : f32
      %37 = vector.broadcast %cst_17 : f32 to vector<16x128xf32>
      %38 = arith.subf %37, %36 : vector<16x128xf32>
      %39 = math.exp %38 : vector<16x128xf32>
      %40 = math.log1p %39 : vector<16x128xf32>
      %cst_18 = arith.constant 0.000000e+00 : f32
      %41 = vector.broadcast %cst_18 : f32 to vector<16x128xf32>
      %42 = arith.subf %41, %29 : vector<16x128xf32>
      %cst_19 = arith.constant 0.000000e+00 : f32
      %43 = vector.broadcast %cst_19 : f32 to vector<16x128xf32>
      %44 = arith.maximumf %42, %43 : vector<16x128xf32>
      %45 = arith.addf %40, %44 : vector<16x128xf32>
      %cst_20 = arith.constant 1.000000e+00 : f32
      %46 = vector.broadcast %cst_20 : f32 to vector<16x128xf32>
      %47 = arith.mulf %46, %35 : vector<16x128xf32>
      %cst_21 = arith.constant 1.000000e+00 : f32
      %48 = vector.broadcast %cst_21 : f32 to vector<16x128xf32>
      %49 = arith.addf %48, %47 : vector<16x128xf32>
      %50 = arith.mulf %49, %45 : vector<16x128xf32>
      %cst_22 = arith.constant 1.000000e+00 : f32
      %51 = vector.broadcast %cst_22 : f32 to vector<16x128xf32>
      %52 = arith.subf %51, %35 : vector<16x128xf32>
      %53 = arith.mulf %52, %29 : vector<16x128xf32>
      %54 = arith.addf %53, %50 : vector<16x128xf32>
      %cst_23 = arith.constant 0.000000e+00 : f32
      %55 = vector.broadcast %cst_23 : f32 to vector<16x128xf32>
      %56 = arith.select %27, %54, %55 : vector<16x128xi1>, vector<16x128xf32>
      %57 = vector.shape_cast %56 : vector<16x128xf32> to vector<2x8x128xf32>
      %cst_24 = arith.constant dense<0.000000e+00> : vector<8x128xf32>
      %58 = vector.multi_reduction <add>, %57, %cst_24 [0] : vector<2x8x128xf32> to vector<8x128xf32>
      %59 = arith.addf %16, %58 : vector<8x128xf32>
      %c1_i32_25 = arith.constant 1 : i32
      %60 = vector.shape_cast %59 : vector<8x128xf32> to vector<1x8x128xf32>
      %61 = arith.addf %15, %60 : vector<1x8x128xf32>
      %c0_26 = arith.constant 0 : index
      %c0_27 = arith.constant 0 : index
      %c0_28 = arith.constant 0 : index
      %62 = vector.load %arg4[%c0_26, %c0_27, %c0_28] : memref<1x8x128xf32, #tpu.memory_space<vmem>>, vector<1x8x128xf32>
      tpu.vector_store %arg4[%c0_26, %c0_27, %c0_28], %61 {strides = array<i32>} : memref<1x8x128xf32, #tpu.memory_space<vmem>>, vector<1x8x128xf32>,
    } else {
    }
    return
  }
  func.func @transform_0(%arg0: i32, %arg1: i32) -> (i32, i32) {
    %c1_i32 = arith.constant 1 : i32
    %0 = arith.muli %arg0, %c1_i32 : i32
    %1 = arith.addi %0, %arg1 : i32
    %c0_i32 = arith.constant 0 : i32
    %2 = arith.minsi %1, %c0_i32 : i32
    %c0_i32_0 = arith.constant 0 : i32
    %c0_i32_1 = arith.constant 0 : i32
    return %2, %c0_i32_0 : i32, i32
  }
  func.func @transform_1(%arg0: i32, %arg1: i32) -> (i32, i32) {
    %c1_i32 = arith.constant 1 : i32
    %0 = arith.muli %arg0, %c1_i32 : i32
    %1 = arith.addi %0, %arg1 : i32
    %c0_i32 = arith.constant 0 : i32
    %2 = arith.minsi %1, %c0_i32 : i32
    %c0_i32_0 = arith.constant 0 : i32
    %c0_i32_1 = arith.constant 0 : i32
    return %2, %c0_i32_0 : i32, i32
  }
  func.func @transform_2(%arg0: i32, %arg1: i32) -> (i32, i32, i32) {
    %c0_i32 = arith.constant 0 : i32
    %c0_i32_0 = arith.constant 0 : i32
    %c0_i32_1 = arith.constant 0 : i32
    return %arg0, %c0_i32, %c0_i32_0 : i32, i32, i32
  }
}

</mosaic_0001>

<bundles_post_ra>
// kernel: tpu_custom_call.1
= control target key start
LH: loop header
LB: loop body
LE: loop exit
PB: predicated region body
PF: predicated region fallthrough
CT: control target
= control target key end

     0   :  { %7 = vsyncpa [#allocation3], 0  ;;  %s332_s0 = inlined_call_operand.hbm [shape: f32[16,128], index: 0, kind: input, shape index: {}]   ;;  %s333_s1 = inlined_call_operand.hbm [shape: f32[16,128], index: 1, kind: input, shape index: {}]   ;;  %s334_s2 = inlined_call_operand.hbm [shape: f32[1,8,128], index: 2, kind: output, shape index: {}]  }
   0x1   :  { %8 = vsyncpa [#allocation6], 0 }
   0x2   :  { %9 = vsyncpa [#allocation4], 0  ;;  %s303_s9 = smov [#allocation2]  }
   0x3   :  { %s21_s10 = sshll.u32 %s303_s9, 4  ;;  %s22_s10 = int_to_ptr.vmem [resolvable:$true] %s21_s10 }
   0x4   :  { %s245_s11 = scalar_lea.vmem %s22_s10, 256  ;;  %p250_p1 = scmp.lt.s32.totalorder %s22_s10, %s22_s10 }
   0x5   :  { %p246_p0 = scmp.ne.s32.totalorder %s22_s10, %s245_s11  ;;  %p251_p2 = scmp.lt.s32.totalorder %s245_s11, %s245_s11 }
   0x7   :  { %p252_p3 = por %p251_p2, %p250_p1 }
   0x9   :  { %p253_p4 = pnand %p252_p3, %p246_p0 }
   0xb   :  { %256 = shalt.err (!%p253_p4)
}
   0xc   :  { %s304_s12 = smov 128   ;;  %s305_s13 = smov 8  }
   0xd   :  { %27 = dma.hbm_to_vmem [thread:$0]  %s332_s0, 256, %s22_s10, [#allocation3], %s304_s12, %s304_s12, %s305_s13  }
   0xe   :  { %s306_s16 = smov [#allocation5]  }
   0xf   :  { %s39_s17 = sshll.u32 %s306_s16, 4  ;;  %s40_s17 = int_to_ptr.vmem [resolvable:$true] %s39_s17 }
  0x10   :  { %s265_s18 = scalar_lea.vmem %s40_s17, 256  ;;  %p270_p6 = scmp.lt.s32.totalorder %s40_s17, %s40_s17 }
  0x11   :  { %p266_p5 = scmp.ne.s32.totalorder %s40_s17, %s265_s18  ;;  %p271_p7 = scmp.lt.s32.totalorder %s265_s18, %s265_s18 }
  0x13   :  { %p272_p8 = por %p271_p7, %p270_p6 }
  0x15   :  { %p273_p9 = pnand %p272_p8, %p266_p5 }
  0x17   :  { %276 = shalt.err (!%p273_p9)
}
  0x18   :  { %45 = dma.hbm_to_vmem [thread:$0]  %s333_s1, 256, %s40_s17, [#allocation6], %s304_s12, %s304_s12, %s305_s13  }
  0x19   :  { %297 = dma.done.wait [#allocation3], 256  }
  0x1a   :  { %298 = vsyncadd [#allocation3], 4294967040 }
  0x1b   :  { %299 = dma.done.wait [#allocation6], 256  }
  0x1c   :  { %300 = vsyncadd [#allocation6], 4294967040  ;;  %v73_v0 = vld [vmem:[#allocation2] sm:$0xff]  ;;  %v74_v1 = vld [vmem:[#allocation2 + $0x8] sm:$0xff]  ;;  %s307_s0 = smov [#allocation7]  }
  0x1d   :  { %v81_v2 = vand.u32 2147483647, %v73_v0  ;;  %v82_v3 = vand.u32 2147483647, %v74_v1  ;;  %v75_v12 = vld [vmem:[#allocation5] sm:$0xff]  ;;  %v76_v13 = vld [vmem:[#allocation5 + $0x8] sm:$0xff] }
  0x1e   :  { %v77_v15 = vmul.f32 0.9, %v75_v12  ;;  %v78_v17 = vmul.f32 0.9, %v76_v13  ;;  %v107_v22 = vsub.f32 0.0, %v73_v0  ;;  %v108_v25 = vsub.f32 0.0, %v74_v1 }
  0x1f   :  { %v83_v4 = vsub.f32 0.0, %v81_v2  ;;  %v84_v5 = vsub.f32 0.0, %v82_v3  ;;  %s209_s1 = sshll.u32 %s307_s0, 4  ;;  %s210_s1 = int_to_ptr.vmem [resolvable:$true] %s209_s1 }
  0x20   :  { %v79_v19 = vadd.f32 0.05, %v77_v15  ;;  %v80_v23 = vadd.f32 0.05, %v78_v17  ;;  %v109_v29 = vmax.f32 %v107_v22, 0.0  ;;  %v110_v33 = vmax.f32 %v108_v25, 0.0  ;;  %p282_p11 = scmp.lt.s32.totalorder %s210_s1, %s210_s1 }
  0x21   :  { %v85_v6 = vmul.f32 1.442695, %v83_v4  ;;  %v87_v7 = vmul.f32 1.442695, %v84_v5  ;;  %s277_s21 = scalar_lea.vmem %s210_s1, 128 }
  0x22   :  { %v117_v30 = vsub.f32 1.0, %v79_v19  ;;  %v118_v34 = vsub.f32 1.0, %v80_v23  ;;  %v113_v36 = vadd.f32 1.0, %v79_v19  ;;  %v114_v38 = vadd.f32 1.0, %v80_v23  ;;  %p278_p10 = scmp.ne.s32.totalorder %s210_s1, %s277_s21  ;;  %p283_p12 = scmp.lt.s32.totalorder %s277_s21, %s277_s21 }
  0x23   :  { %229 = vpow2.f32 %v85_v6 }
  0x24   :  { %231 = vpow2.f32 %v87_v7  ;;  %v119_v41 = vmul.f32 %v117_v30, %v73_v0  ;;  %v120_v43 = vmul.f32 %v118_v34, %v74_v1  ;;  %p284_p13 = por %p283_p12, %p282_p11 }
  0x26   :  { %p285_p0 = pnand %p284_p13, %p278_p10 }
  0x30   :  { %v230_v8 = vpop.eup %229 }
  0x31   :  { %v232_v9 = vpop.eup %231  ;;  %v89_v10 = vadd.f32 1.0, %v230_v8  ;;  %v92_v14 = vmul.f32 -0.5, %v230_v8  ;;  %v95_v20 = vand.u32 2147483647, %v230_v8 }
  0x32   :  { %v98_v11 = vadd.f32 1.0, %v232_v9  ;;  %v101_v16 = vmul.f32 -0.5, %v232_v9  ;;  %v104_v24 = vand.u32 2147483647, %v232_v9 }
  0x33   :  { %233 = vlog2.f32 %v89_v10  ;;  %v93_v18 = vadd.f32 1.0, %v92_v14  ;;  %vm96_vm0 = vcmp.lt.f32.partialorder %v95_v20, 0.0004427343 }
  0x34   :  { %235 = vlog2.f32 %v98_v11  ;;  %v102_v21 = vadd.f32 1.0, %v101_v16  ;;  %vm105_vm1 = vcmp.lt.f32.partialorder %v104_v24, 0.0004427343 }
  0x35   :  { %v94_v26 = vmul.f32 %v230_v8, %v93_v18 }
  0x36   :  { %v103_v28 = vmul.f32 %v232_v9, %v102_v21 }
  0x40   :  { %v234_v27 = vpop.eup %233 }
  0x41   :  { %v236_v31 = vpop.eup %235  ;;  %v91_v32 = vmul.f32 0.6931472, %v234_v27 }
  0x42   :  { %v100_v35 = vmul.f32 0.6931472, %v236_v31 }
  0x43   :  { %v97_v37 = vsel %vm96_vm0, %v94_v26, %v91_v32 }
  0x44   :  { %v106_v39 = vsel %vm105_vm1, %v103_v28, %v100_v35  ;;  %v111_v40 = vadd.f32 %v109_v29, %v97_v37 }
  0x45   :  { %v112_v42 = vadd.f32 %v110_v33, %v106_v39 }
  0x46   :  { %v115_v44 = vmul.f32 %v113_v36, %v111_v40 }
  0x47   :  { %v116_v45 = vmul.f32 %v114_v38, %v112_v42 }
  0x48   :  { %v121_v46 = vadd.f32 %v119_v41, %v115_v44 }
  0x49   :  { %v122_v47 = vadd.f32 %v120_v43, %v116_v45 }
  0x4b   :  { %v123_v48 = vadd.f32 %v122_v47, %v121_v46 }
  0x4d   :  { %126 = vst [vmem:[#allocation7] sm:$0xff] %v123_v48 }
  0x4e   :  { %288 = shalt.err (!%p285_p0)
}
  0x4f   :  { %212 = dma.vmem_to_hbm [thread:$0]  %s210_s1, 128, %s334_s2, [#allocation4]  }
  0x50   :  { %301 = dma.done.wait [#allocation4], 128  }
  0x51   :  { %302 = vsyncadd [#allocation4], 4294967168 }
  0x52   :  { %216 = vsyncpa [#allocation3], 1 }
  0x53   :  { %217 = vsyncpa [#allocation6], 1 }
  0x54   :  { %218 = vsyncpa [#allocation4], 1 }

</bundles_post_ra>
